<compile_context>
chip_gen: v7x
topology: tpu7x:2x2x1
jax: 0.10.0
libtpu: 0.0.40
codegen_flags: <defaults>
</compile_context>

<pallas_src>
import jax
import jax.numpy as jnp
from jax import lax
from jax.experimental import pallas as pl
from jax.experimental.pallas import tpu as pltpu

BN_EPS = 1e-5
LANE = 128
SUBLANE = 8


def _round_up(x, m):
    return (x + m - 1) // m * m


def _cdiv(a, b):
    return (a + b - 1) // b


def _budgets():
    """Per-generation VMEM limit and per-step tile budget."""
    cap = 64 * 1024 * 1024                               # conservative fallback (v7x)
    try:
        cap = int(getattr(pltpu.get_tpu_info(), "vmem_capacity_bytes", cap))
    except Exception:
        pass
    vmem_limit = min(cap * 3 // 4, 100 * 1024 * 1024)    # 48 MiB on v7x, ~96 MiB on v5e/v6e
    tile_budget = cap // 5                               # ~12.8 MiB v7x, ~25.6 MiB v5e/v6e
    return int(vmem_limit), int(tile_budget)


def _tile_rows(budget_bytes, bytes_per_row, cap_rows):
    """Largest multiple-of-8 row tile whose per-step bytes fit the budget."""
    t = min(budget_bytes // max(bytes_per_row, 1), cap_rows)
    return int(max(SUBLANE, (t // SUBLANE) * SUBLANE))


def _largest_divisor_tile(total_rows, cap_rows):
    """Largest multiple-of-8 tile dividing total_rows (itself a multiple of 8), <= cap_rows."""
    units = total_rows // SUBLANE
    for d in range(min(units, max(cap_rows // SUBLANE, 1)), 0, -1):
        if units % d == 0:
            return d * SUBLANE
    return SUBLANE


def _pool_stats_kernel(x_ref, pooled_ref, stat_ref):
    """Pass 1: 2x2 tap combine (VPU) + per-channel sum / sum-of-squares (MXU).

    x_ref      : (tm, 4*c_pad) window-tap-major channels-last input tile
    pooled_ref : (tm, c_pad)   sum of the 4 pooling taps (the 1/4 is folded into pass 2)
    stat_ref   : (8, 2*c_pad)  resident accumulator: [:, :c_pad]=sum, [:, c_pad:]=sum of squares
    """
    c_pad = pooled_ref.shape[1]
    tm = x_ref.shape[0]

    @pl.when(pl.program_id(1) == 0)
    def _init():
        stat_ref[...] = jnp.zeros_like(stat_ref)

    x = x_ref[...]
    x0 = x[:, 0 * c_pad:1 * c_pad]
    x1 = x[:, 1 * c_pad:2 * c_pad]
    x2 = x[:, 2 * c_pad:3 * c_pad]
    x3 = x[:, 3 * c_pad:4 * c_pad]
    p = (x0 + x1) + (x2 + x3)                       # pooled-window sum, (8,128)-aligned adds
    q = (x0 * x0 + x1 * x1) + (x2 * x2 + x3 * x3)   # per-pixel sum of squared taps
    pooled_ref[...] = p

    # Column reductions on the otherwise-idle MXU; all 8 result rows are identical
    # so the accumulator stores stay unmasked 8-sublane, 128-lane-aligned stores.
    ones8 = jnp.ones((SUBLANE, tm), jnp.float32)
    stat_ref[:, :c_pad] += jnp.dot(ones8, p, preferred_element_type=jnp.float32)
    stat_ref[:, c_pad:] += jnp.dot(ones8, q, preferred_element_type=jnp.float32)


def _fused_matmul_kernel(x_ref, w_ref, b_ref, o_ref):
    """Pass 2: pooled activations @ (BN-affine + 1x1 conv + 1/4 pool) weight + bias."""
    o_ref[...] = jnp.dot(x_ref[...], w_ref[...],
                         preferred_element_type=jnp.float32) + b_ref[...]


@jax.jit
def transition_layer_forward(x_nchw, bn_gamma, bn_beta, conv_w, conv_b):
    n, c, h, w = x_nchw.shape
    assert h % 2 == 0 and w % 2 == 0, "even spatial dims expected"
    # TODO(synk): odd H/W would need the pool-cropped border added back into the
    # BatchNorm batch statistics; not handled here.
    # TODO(synk): BatchNorm2d running_mean/running_var buffer updates (training-mode
    # side effect) are not modeled; the forward output is unaffected.
    hp, wp = h // 2, w // 2
    c_out = conv_w.shape[0]
    c_pad = _round_up(c, LANE)
    c_out_pad = _round_up(c_out, LANE)
    m_rows = n * hp * wp

    vmem_limit, tile_budget = _budgets()

    # Window-tap-major channels-last layout: one row per pooled output pixel.
    x = x_nchw.astype(jnp.float32)
    xw = x.reshape(n, c, hp, 2, wp, 2)
    xw = jnp.transpose(xw, (0, 2, 4, 3, 5, 1))                 # (n, hp, wp, 2, 2, c)
    xw = xw.reshape(m_rows, 4, c)
    if c_pad != c:
        xw = jnp.pad(xw, ((0, 0), (0, 0), (0, c_pad - c)))     # zero channel padding
    xw = xw.reshape(m_rows, 4 * c_pad)

    # ---- Pass 1 tiling: wide-input streaming pass, 2-way core split ---------
    row_bytes1 = 2 * (4 * c_pad + c_pad) * 4                   # dbl-buffered in + pooled out
    tm1 = _tile_rows(tile_budget, row_bytes1, _round_up(_cdiv(m_rows, 2), SUBLANE))
    inner1 = _cdiv(m_rows, 2 * tm1)
    tm1 = max(SUBLANE, _round_up(_cdiv(m_rows, 2 * inner1), SUBLANE))   # shrink -> less padding
    m_pad = 2 * tm1 * inner1
    if m_pad != m_rows:
        xw = jnp.pad(xw, ((0, m_pad - m_rows), (0, 0)))        # zero rows: stats-safe

    pooled, stats = pl.pallas_call(
        _pool_stats_kernel,
        out_shape=(jax.ShapeDtypeStruct((m_pad, c_pad), jnp.float32),
                   jax.ShapeDtypeStruct((2 * SUBLANE, 2 * c_pad), jnp.float32)),
        grid=(2, inner1),
        in_specs=[pl.BlockSpec((tm1, 4 * c_pad), lambda p, i: (p * inner1 + i, 0))],
        out_specs=(pl.BlockSpec((tm1, c_pad), lambda p, i: (p * inner1 + i, 0)),
                   pl.BlockSpec((SUBLANE, 2 * c_pad), lambda p, i: (p, 0))),
        compiler_params=pltpu.CompilerParams(
            dimension_semantics=("parallel", "arbitrary"),
            vmem_limit_bytes=vmem_limit),
    )(xw)

    # Combine the two cores' partial stats (rows within each (8, 2*c_pad) block are identical).
    tot = stats[0, :] + stats[SUBLANE, :]
    count = jnp.float32(n * h * w)
    mean = tot[:c] / count
    # TODO(synk): E[x^2]-E[x]^2 in one f32 pass can lose precision for huge N*H*W or
    # large-mean inputs; switch to a chunked/Welford combine if that regime matters.
    var = tot[c_pad:c_pad + c] / count - mean * mean
    scale = bn_gamma.astype(jnp.float32) * lax.rsqrt(var + BN_EPS)
    shift = bn_beta.astype(jnp.float32) - mean * scale

    # Fold BN affine + 1x1 conv + 2x2 average-pool normalisation into one matrix:
    #   AvgPool(Conv1x1(BN(x))) == pooled_window_sum @ (0.25*scale*W) + (shift @ W + b)
    w_mat = conv_w.reshape(c_out, c).astype(jnp.float32).T      # (C, C_out)
    w_eff = (0.25 * w_mat) * scale[:, None]
    b_eff = shift @ w_mat + conv_b.astype(jnp.float32)
    # TODO(synk): cast pooled/w_big to bfloat16 (keep f32 accumulation) to halve HBM
    # traffic on v6e/v7x once the required output tolerance allows it.
    w_big = jnp.pad(w_eff, ((0, c_pad - c), (0, c_out_pad - c_out)))
    b_big = jnp.pad(b_eff, (0, c_out_pad - c_out)).reshape(1, c_out_pad)

    # ---- Pass 2 tiling: resident, single-buffered weight counted in the budget ----
    fixed2 = (c_pad * c_out_pad + c_out_pad) * 4               # Buffered(1) resident blocks
    row_bytes2 = 2 * (c_pad + c_out_pad) * 4                   # dbl-buffered in + out
    tm2_cap = _tile_rows(max(tile_budget - fixed2, SUBLANE * row_bytes2),
                         row_bytes2, m_pad)
    tm2 = _largest_divisor_tile(m_pad, tm2_cap)
    # TODO(synk): if the resident weight ever approaches the tile budget (very large C),
    # split pass 2 over a K ("arbitrary") grid axis with an f32 accumulator scratch.

    out_flat = pl.pallas_call(
        _fused_matmul_kernel,
        out_shape=jax.ShapeDtypeStruct((m_pad, c_out_pad), jnp.float32),
        grid=(m_pad // tm2,),
        in_specs=[pl.BlockSpec((tm2, c_pad), lambda i: (i, 0)),
                  pl.BlockSpec((c_pad, c_out_pad), lambda i: (0, 0),
                               pipeline_mode=pl.Buffered(1)),
                  pl.BlockSpec((1, c_out_pad), lambda i: (0, 0),
                               pipeline_mode=pl.Buffered(1))],
        out_specs=pl.BlockSpec((tm2, c_out_pad), lambda i: (i, 0)),
        compiler_params=pltpu.CompilerParams(
            dimension_semantics=("parallel",),
            vmem_limit_bytes=vmem_limit),
    )(pooled, w_big, b_big)

    out = out_flat[:m_rows, :c_out].reshape(n, hp, wp, c_out)
    return jnp.transpose(out, (0, 3, 1, 2))                    # back to NCHW


def reference_forward(x, gamma, beta, conv_w, conv_b):
    c_out = conv_w.shape[0]
    mean = jnp.mean(x, axis=(0, 2, 3), keepdims=True)
    var = jnp.mean((x - mean) ** 2, axis=(0, 2, 3), keepdims=True)
    y = (x - mean) * lax.rsqrt(var + BN_EPS)
    y = y * gamma.reshape(1, -1, 1, 1) + beta.reshape(1, -1, 1, 1)
    y = lax.conv_general_dilated(
        y, conv_w, (1, 1), 'VALID',
        dimension_numbers=('NCHW', 'OIHW', 'NCHW'))
    y = y + conv_b.reshape(1, c_out, 1, 1)
    y = lax.reduce_window(y, 0.0, lax.add,
                          (1, 1, 2, 2), (1, 1, 2, 2), 'VALID') / 4.0
    return y


if __name__ == "__main__":
    N, C, H, W = 2, 4, 16, 16
    THETA = 0.5
    C_OUT = int(THETA * C)

    key = jax.random.PRNGKey(0)
    k1, k2, k3, k4, k5 = jax.random.split(key, 5)
    x = jax.random.normal(k1, (N, C, H, W), jnp.float32)
    bn_gamma = 1.0 + 0.1 * jax.random.normal(k2, (C,), jnp.float32)
    bn_beta = 0.1 * jax.random.normal(k3, (C,), jnp.float32)
    conv_w = jax.random.normal(k4, (C_OUT, C, 1, 1), jnp.float32) * 0.3
    conv_b = jax.random.normal(k5, (C_OUT,), jnp.float32) * 0.1

    out = transition_layer_forward(x, bn_gamma, bn_beta, conv_w, conv_b)
    out = jax.block_until_ready(out)

    ref = reference_forward(x, bn_gamma, bn_beta, conv_w, conv_b)
    assert out.shape == (N, C_OUT, H // 2, W // 2), out.shape
    assert jnp.allclose(out, ref, rtol=1e-4, atol=1e-4), \
        float(jnp.max(jnp.abs(out - ref)))
    print("KERNEL_OK")
</pallas_src>

<mosaic_0001>
module attributes {stable_mosaic.version = 11 : i64} {
  func.func @_pool_stats_kernel(%arg0: i32, %arg1: i32, %arg2: memref<64x512xf32, #tpu.memory_space<vmem>>, %arg3: memref<64x128xf32, #tpu.memory_space<vmem>>, %arg4: memref<8x256xf32, #tpu.memory_space<vmem>>) attributes {dimension_semantics = [#tpu.dimension_semantics<parallel>, #tpu.dimension_semantics<arbitrary>], iteration_bounds = array<i64: 2, 1>, scalar_prefetch = 0 : i64, scratch_operands = 0 : i64, tpu.core_type = #tpu.core_type<tc>, window_params = [{transform_indices = @transform_0, window_bounds = array<i64: 64, 512>}, {transform_indices = @transform_1, window_bounds = array<i64: 64, 128>}, {transform_indices = @transform_2, window_bounds = array<i64: 8, 256>}]} {
    %c0_i32 = arith.constant 0 : i32
    %0 = arith.cmpi eq, %arg1, %c0_i32 : i32
    %1 = arith.extui %0 : i1 to i32
    %c0_i32_0 = arith.constant 0 : i32
    %2 = arith.cmpi ne, %1, %c0_i32_0 : i32
    scf.if %2 {
      %cst_13 = arith.constant 0.000000e+00 : f32
      %28 = vector.broadcast %cst_13 : f32 to vector<8x256xf32>
      %c0_14 = arith.constant 0 : index
      %c0_15 = arith.constant 0 : index
      %29 = vector.load %arg4[%c0_14, %c0_15] : memref<8x256xf32, #tpu.memory_space<vmem>>, vector<8x256xf32>
      tpu.vector_store %arg4[%c0_14, %c0_15], %28 {strides = array<i32>} : memref<8x256xf32, #tpu.memory_space<vmem>>, vector<8x256xf32>,
    } else {
    }
    %c0 = arith.constant 0 : index
    %c0_1 = arith.constant 0 : index
    %3 = vector.load %arg2[%c0, %c0_1] : memref<64x512xf32, #tpu.memory_space<vmem>>, vector<64x512xf32>
    %4 = vector.extract_strided_slice %3 {offsets = [0, 0], sizes = [64, 128], strides = [1, 1]} : vector<64x512xf32> to vector<64x128xf32>
    %5 = vector.extract_strided_slice %3 {offsets = [0, 128], sizes = [64, 128], strides = [1, 1]} : vector<64x512xf32> to vector<64x128xf32>
    %6 = vector.extract_strided_slice %3 {offsets = [0, 256], sizes = [64, 128], strides = [1, 1]} : vector<64x512xf32> to vector<64x128xf32>
    %7 = vector.extract_strided_slice %3 {offsets = [0, 384], sizes = [64, 128], strides = [1, 1]} : vector<64x512xf32> to vector<64x128xf32>
    %8 = arith.addf %4, %5 : vector<64x128xf32>
    %9 = arith.addf %6, %7 : vector<64x128xf32>
    %10 = arith.addf %8, %9 : vector<64x128xf32>
    %11 = arith.mulf %4, %4 : vector<64x128xf32>
    %12 = arith.mulf %5, %5 : vector<64x128xf32>
    %13 = arith.addf %11, %12 : vector<64x128xf32>
    %14 = arith.mulf %6, %6 : vector<64x128xf32>
    %15 = arith.mulf %7, %7 : vector<64x128xf32>
    %16 = arith.addf %14, %15 : vector<64x128xf32>
    %17 = arith.addf %13, %16 : vector<64x128xf32>
    %c0_2 = arith.constant 0 : index
    %c0_3 = arith.constant 0 : index
    %18 = vector.load %arg3[%c0_2, %c0_3] : memref<64x128xf32, #tpu.memory_space<vmem>>, vector<64x128xf32>
    tpu.vector_store %arg3[%c0_2, %c0_3], %10 {strides = array<i32>} : memref<64x128xf32, #tpu.memory_space<vmem>>, vector<64x128xf32>,
    %cst = arith.constant 1.000000e+00 : f32
    %19 = vector.broadcast %cst : f32 to vector<8x64xf32>
    %c0_4 = arith.constant 0 : index
    %c0_5 = arith.constant 0 : index
    %20 = vector.load %arg4[%c0_4, %c0_5] : memref<8x256xf32, #tpu.memory_space<vmem>>, vector<8x128xf32>
    %cst_6 = arith.constant dense<0.000000e+00> : vector<8x128xf32>
    %21 = tpu.matmul %19, %10, %cst_6 {dimension_numbers = #tpu.dot_dimension_numbers<[1], [0], [0], [1], [0, 0, 1, 1], [], []>} : vector<8x64xf32>, vector<64x128xf32>, vector<8x128xf32> -> vector<8x128xf32>
    %22 = arith.addf %20, %21 : vector<8x128xf32>
    %c0_7 = arith.constant 0 : index
    %c0_8 = arith.constant 0 : index
    %23 = vector.load %arg4[%c0_7, %c0_8] : memref<8x256xf32, #tpu.memory_space<vmem>>, vector<8x128xf32>
    tpu.vector_store %arg4[%c0_7, %c0_8], %22 {strides = array<i32>} : memref<8x256xf32, #tpu.memory_space<vmem>>, vector<8x128xf32>,
    %c0_9 = arith.constant 0 : index
    %c128 = arith.constant 128 : index
    %24 = vector.load %arg4[%c0_9, %c128] : memref<8x256xf32, #tpu.memory_space<vmem>>, vector<8x128xf32>
    %cst_10 = arith.constant dense<0.000000e+00> : vector<8x128xf32>
    %25 = tpu.matmul %19, %17, %cst_10 {dimension_numbers = #tpu.dot_dimension_numbers<[1], [0], [0], [1], [0, 0, 1, 1], [], []>} : vector<8x64xf32>, vector<64x128xf32>, vector<8x128xf32> -> vector<8x128xf32>
    %26 = arith.addf %24, %25 : vector<8x128xf32>
    %c0_11 = arith.constant 0 : index
    %c128_12 = arith.constant 128 : index
    %27 = vector.load %arg4[%c0_11, %c128_12] : memref<8x256xf32, #tpu.memory_space<vmem>>, vector<8x128xf32>
    tpu.vector_store %arg4[%c0_11, %c128_12], %26 {strides = array<i32>} : memref<8x256xf32, #tpu.memory_space<vmem>>, vector<8x128xf32>,
    return
  }
  func.func @transform_0(%arg0: i32, %arg1: i32) -> (i32, i32) {
    %c1_i32 = arith.constant 1 : i32
    %0 = arith.muli %arg0, %c1_i32 : i32
    %1 = arith.addi %0, %arg1 : i32
    %c0_i32 = arith.constant 0 : i32
    %c0_i32_0 = arith.constant 0 : i32
    return %1, %c0_i32 : i32, i32
  }
  func.func @transform_1(%arg0: i32, %arg1: i32) -> (i32, i32) {
    %c1_i32 = arith.constant 1 : i32
    %0 = arith.muli %arg0, %c1_i32 : i32
    %1 = arith.addi %0, %arg1 : i32
    %c0_i32 = arith.constant 0 : i32
    %c0_i32_0 = arith.constant 0 : i32
    return %1, %c0_i32 : i32, i32
  }
  func.func @transform_2(%arg0: i32, %arg1: i32) -> (i32, i32) {
    %c0_i32 = arith.constant 0 : i32
    %c0_i32_0 = arith.constant 0 : i32
    return %arg0, %c0_i32 : i32, i32
  }
}

module attributes {stable_mosaic.version = 11 : i64} {
  func.func @_fused_matmul_kernel(%arg0: i32, %arg1: memref<128x128xf32, #tpu.memory_space<vmem>>, %arg2: memref<128x128xf32, #tpu.memory_space<vmem>>, %arg3: memref<1x128xf32, #tpu.memory_space<vmem>>, %arg4: memref<128x128xf32, #tpu.memory_space<vmem>>) attributes {dimension_semantics = [#tpu.dimension_semantics<parallel>], iteration_bounds = array<i64: 1>, scalar_prefetch = 0 : i64, scratch_operands = 0 : i64, tpu.core_type = #tpu.core_type<tc>, window_params = [{transform_indices = @transform_0, window_bounds = array<i64: 128, 128>}, {pipeline_mode = #tpu.pipeline_mode<synchronous>, transform_indices = @transform_1, window_bounds = array<i64: 128, 128>}, {pipeline_mode = #tpu.pipeline_mode<synchronous>, transform_indices = @transform_2, window_bounds = array<i64: 1, 128>}, {transform_indices = @transform_3, window_bounds = array<i64: 128, 128>}]} {
    %c0 = arith.constant 0 : index
    %c0_0 = arith.constant 0 : index
    %0 = vector.load %arg1[%c0, %c0_0] : memref<128x128xf32, #tpu.memory_space<vmem>>, vector<128x128xf32>
    %c0_1 = arith.constant 0 : index
    %c0_2 = arith.constant 0 : index
    %1 = vector.load %arg2[%c0_1, %c0_2] : memref<128x128xf32, #tpu.memory_space<vmem>>, vector<128x128xf32>
    %cst = arith.constant dense<0.000000e+00> : vector<128x128xf32>
    %2 = tpu.matmul %0, %1, %cst {dimension_numbers = #tpu.dot_dimension_numbers<[1], [0], [0], [1], [0, 0, 1, 1], [], []>} : vector<128x128xf32>, vector<128x128xf32>, vector<128x128xf32> -> vector<128x128xf32>
    %c0_3 = arith.constant 0 : index
    %c0_4 = arith.constant 0 : index
    %3 = vector.load %arg3[%c0_3, %c0_4] : memref<1x128xf32, #tpu.memory_space<vmem>>, vector<1x128xf32>
    %4 = vector.broadcast %3 : vector<1x128xf32> to vector<128x128xf32>
    %5 = arith.addf %2, %4 : vector<128x128xf32>
    %c0_5 = arith.constant 0 : index
    %c0_6 = arith.constant 0 : index
    %6 = vector.load %arg4[%c0_5, %c0_6] : memref<128x128xf32, #tpu.memory_space<vmem>>, vector<128x128xf32>
    tpu.vector_store %arg4[%c0_5, %c0_6], %5 {strides = array<i32>} : memref<128x128xf32, #tpu.memory_space<vmem>>, vector<128x128xf32>,
    return
  }
  func.func @transform_0(%arg0: i32) -> (i32, i32) {
    %c0_i32 = arith.constant 0 : i32
    %c0_i32_0 = arith.constant 0 : i32
    return %arg0, %c0_i32 : i32, i32
  }
  func.func @transform_1(%arg0: i32) -> (i32, i32) {
    %c0_i32 = arith.constant 0 : i32
    %c0_i32_0 = arith.constant 0 : i32
    %c0_i32_1 = arith.constant 0 : i32
    return %c0_i32, %c0_i32_0 : i32, i32
  }
  func.func @transform_2(%arg0: i32) -> (i32, i32) {
    %c0_i32 = arith.constant 0 : i32
    %c0_i32_0 = arith.constant 0 : i32
    %c0_i32_1 = arith.constant 0 : i32
    return %c0_i32, %c0_i32_0 : i32, i32
  }
  func.func @transform_3(%arg0: i32) -> (i32, i32) {
    %c0_i32 = arith.constant 0 : i32
    %c0_i32_0 = arith.constant 0 : i32
    return %arg0, %c0_i32 : i32, i32
  }
}

</mosaic_0001>

<bundles_post_ra>
// kernel: transition_layer_forward.2
= control target key start
LH: loop header
LB: loop body
LE: loop exit
PB: predicated region body
PF: predicated region fallthrough
CT: control target
= control target key end

     0   :  { %s733_s9 = smov 0   ;;  %s735_s10 = smov 0   ;;  %s826_s0 = inlined_call_operand.vmem [shape: f32[128,512], index: 0, kind: input, shape index: {}]   ;;  %s827_s1 = inlined_call_operand.vmem [shape: f32[128,128], index: 1, kind: output, shape index: {0}]   ;;  %s828_s2 = inlined_call_operand.vmem [shape: f32[16,256], index: 2, kind: output, shape index: {1}]  }
   0x1   :  { %s737_s11 = smov 0  }
   0x2 LB: > { %s25_s12 = sadd.s32 1, %s708_s10  ;;  %p568_p0 = scmp.ge.s32.totalorder %s712_s11, 1  ;;  %s712_s11 = sphi %s737_s11, %s13_s11   ;;  %s708_s10 = sphi %s735_s10, %s830_s10   ;;  %s704_s9 = sphi %s733_s9, %s829_s9  }
   0x3   : > { %p27_p1 = scmp.ge.s32.totalorder %s25_s12, 2  ;;  %p135_p2 = scmp.lt.s32.totalorder %s712_s11, 3 }
   0x5   : > { %s832_s12 = smov (%p27_p1, %s25_s12), 0  ;;  %p136_p3 = pnand %p568_p0, %p135_p2 }
   0x6   : > { %s569_s13 = sshll.u32 (!%p136_p3), %s704_s9, 3  ;;  %v714_v0 = vmov (!%p136_p3), 0.0|0.0   ;;  %vm715_vm0 = vmmov (!%p136_p3), 0   ;;  %v716_v1 = vmov (!%p136_p3), 0.0   ;;  %vm314_vm1 = vcmask (!%p136_p3), 523264   ;;  %p182_p5 = scmp.lt.s32.totalorder (!%p136_p3), %s704_s9, 1 }
   0x7   : > { %139 = sbr.rel (%p136_p3) target bundleno = 263 (0x107), region = 24  ;;  %638 = vmatprep.subr.bf16.mxu0 (!%p136_p3), %v714_v0  ;;  %p167_p4 = scmp.lt.s32.totalorder (!%p136_p3), %s569_s13, 15  ;;  %650 = vmatprep.subr.bf16.mxu1 (!%p136_p3), %v714_v0 }
   0x8   : > { %616 = vmatprep.mubr.msk.f32.mxu0 (!%p136_p3), %vm715_vm0, %v716_v1  ;;  %635 = vmatprep.mubr.msk.f32.mxu1 (!%p136_p3), %vm715_vm0, %v716_v1 }
   0xe   : > { %s834_s13 = smov (!%p167_p4, %s569_s13), 15  ;;  %s836_s9 = smov (!%p182_p5, %s704_s9), 1 }
   0xf   : > { %s580_s14 = sshll.u32 %s834_s13, 5  ;;  %s573_s18 = sshll.u32 %s834_s13, 3 }
  0x10   : > { %s759_s17 = scalar_lea.vmem %s826_s0, %s580_s14  ;;  %s773_s21 = scalar_lea.vmem %s827_s1, %s573_s18 }
  0x11   : > { %v193_v2 = vld [vmem:[%s759_s17] sm:$0xff]  ;;  %v194_v3 = vld [vmem:[%s759_s17 + $0x8] sm:$0xff]  ;;  %v195_v4 = vld [vmem:[%s759_s17 + $0x10] sm:$0xff]  ;;  %s581_s22 = sshll.u32 %s836_s9, 4 }
  0x12   : > { %v196_v5 = vld [vmem:[%s759_s17 + $0x18] sm:$0xff]  ;;  %v197_v6 = vld [vmem:[%s759_s17 + $0x20] sm:$0xff]  ;;  %v198_v7 = vld [vmem:[%s759_s17 + $0x28] sm:$0xff]  ;;  %v225_v8 = vadd.f32 %v194_v3, %v193_v2  ;;  %v249_v9 = vmul.f32 %v193_v2, %v193_v2  ;;  %v257_v10 = vmul.f32 %v194_v3, %v194_v3  ;;  %v273_v11 = vmul.f32 %v195_v4, %v195_v4  ;;  %s186_s25 = scalar_lea.vmem %s828_s2, %s581_s22 }
  0x13   : > { %v199_v12 = vld [vmem:[%s759_s17 + $0x30] sm:$0xff]  ;;  %v200_v13 = vld [vmem:[%s759_s17 + $0x38] sm:$0xff]  ;;  %v226_v14 = vadd.f32 %v198_v7, %v197_v6  ;;  %v233_v15 = vadd.f32 %v196_v5, %v195_v4  ;;  %v250_v16 = vmul.f32 %v197_v6, %v197_v6  ;;  %v258_v17 = vmul.f32 %v198_v7, %v198_v7  ;;  %v201_v18 = vld [vmem:[%s759_s17 + $0x40] sm:$0xff] }
  0x14   : > { %v234_v19 = vadd.f32 %v200_v13, %v199_v12  ;;  %v265_v20 = vadd.f32 %v257_v10, %v249_v9  ;;  %v274_v21 = vmul.f32 %v199_v12, %v199_v12  ;;  %v281_v22 = vmul.f32 %v196_v5, %v196_v5  ;;  %v202_v23 = vld [vmem:[%s759_s17 + $0x48] sm:$0xff]  ;;  %v203_v24 = vld [vmem:[%s759_s17 + $0x50] sm:$0xff]  ;;  %v204_v25 = vld [vmem:[%s759_s17 + $0x58] sm:$0xff] }
  0x15   : > { %v241_v26 = vadd.f32 %v233_v15, %v225_v8  ;;  %v266_v27 = vadd.f32 %v258_v17, %v250_v16  ;;  %v282_v28 = vmul.f32 %v200_v13, %v200_v13  ;;  %v205_v29 = vld [vmem:[%s759_s17 + $0x60] sm:$0xff]  ;;  %v206_v30 = vld [vmem:[%s759_s17 + $0x68] sm:$0xff]  ;;  %v207_v31 = vld [vmem:[%s759_s17 + $0x70] sm:$0xff]  ;;  %v227_v32 = vadd.f32 %v202_v23, %v201_v18 }
  0x16   : > { %v242_v33 = vadd.f32 %v234_v19, %v226_v14  ;;  %v289_v34 = vadd.f32 %v281_v22, %v273_v11  ;;  %v208_v35 = vld [vmem:[%s759_s17 + $0x78] sm:$0xff]  ;;  %v228_v36 = vadd.f32 %v206_v30, %v205_v29  ;;  %v235_v37 = vadd.f32 %v204_v25, %v203_v24  ;;  %v209_v46 = vld [vmem:[%s759_s17 + $0x80] sm:$0xff]  ;;  %v210_v47 = vld [vmem:[%s759_s17 + $0x88] sm:$0xff] }
  0x17   : > { %305 = vst [vmem:[%s773_s21] sm:$0xff] %v241_v26  ;;  %v290_v38 = vadd.f32 %v282_v28, %v274_v21  ;;  %v236_v39 = vadd.f32 %v208_v35, %v207_v31  ;;  %v251_v40 = vmul.f32 %v201_v18, %v201_v18  ;;  %v252_v41 = vmul.f32 %v205_v29, %v205_v29  ;;  %v211_v48 = vld [vmem:[%s759_s17 + $0x90] sm:$0xff]  ;;  %v212_v53 = vld [vmem:[%s759_s17 + $0x98] sm:$0xff]  ;;  %v213_v54 = vld [vmem:[%s759_s17 + $0xa0] sm:$0xff] }
  0x18   : > { %306 = vst [vmem:[%s773_s21 + $0x8] sm:$0xff] %v242_v33  ;;  %v639_v42 = vpack.c.bf16 %v242_v33, %v241_v26  ;;  %v297_v43 = vadd.f32 %v289_v34, %v265_v20  ;;  %v243_v44 = vadd.f32 %v235_v37, %v227_v32  ;;  %v259_v45 = vmul.f32 %v202_v23, %v202_v23  ;;  %v214_v55 = vld [vmem:[%s759_s17 + $0xa8] sm:$0xff]  ;;  %v215_v60 = vld [vmem:[%s759_s17 + $0xb0] sm:$0xff]  ;;  %v216_v61 = vld [vmem:[%s759_s17 + $0xb8] sm:$0xff] }
  0x19   : > { %v298_v49 = vadd.f32 %v290_v38, %v266_v27  ;;  %v244_v50 = vadd.f32 %v236_v39, %v228_v36  ;;  %v260_v51 = vmul.f32 %v206_v30, %v206_v30  ;;  %v275_v52 = vmul.f32 %v203_v24, %v203_v24  ;;  %v217_v11 = vld [vmem:[%s759_s17 + $0xc0] sm:$0xff]  ;;  %v218_v12 = vld [vmem:[%s759_s17 + $0xc8] sm:$0xff]  ;;  %v219_v16 = vld [vmem:[%s759_s17 + $0xd0] sm:$0xff] }
  0x1a   : > { %640 = vmatpush3.bf16.msra.mxu0 %v639_v42  ;;  %307 = vst [vmem:[%s773_s21 + $0x10] sm:$0xff] %v243_v44  ;;  %v267_v56 = vadd.f32 %v259_v45, %v251_v40  ;;  %v276_v57 = vmul.f32 %v207_v31, %v207_v31  ;;  %v283_v58 = vmul.f32 %v204_v25, %v204_v25  ;;  %v221_v17 = vld [vmem:[%s759_s17 + $0xe0] sm:$0xff]  ;;  %v222_v18 = vld [vmem:[%s759_s17 + $0xe8] sm:$0xff]  ;;  %v220_v23 = vld [vmem:[%s759_s17 + $0xd8] sm:$0xff] }
  0x1b   : > { %v284_v59 = vmul.f32 %v208_v35, %v208_v35  ;;  %v651_v62 = vpack.c.bf16 %v298_v49, %v297_v43  ;;  %641 = vmatprep.subr.bf16.mxu0 %v714_v0  ;;  %308 = vst [vmem:[%s773_s21 + $0x18] sm:$0xff] %v244_v50  ;;  %v642_v63 = vpack.c.bf16 %v244_v50, %v243_v44  ;;  %v223_v24 = vld [vmem:[%s759_s17 + $0xf0] sm:$0xff]  ;;  %v224_v25 = vld [vmem:[%s759_s17 + $0xf8] sm:$0xff] }
  0x1c   : > { %v268_v1 = vadd.f32 %v260_v51, %v252_v41  ;;  %v229_v2 = vadd.f32 %v210_v47, %v209_v46  ;;  %v291_v3 = vadd.f32 %v283_v58, %v275_v52  ;;  %v230_v5 = vadd.f32 %v214_v55, %v213_v54 }
  0x1d   : > { %v292_v4 = vadd.f32 %v284_v59, %v276_v57  ;;  %v237_v6 = vadd.f32 %v212_v53, %v211_v48  ;;  %652 = vmatpush3.bf16.msra.mxu1 %v651_v62  ;;  %v238_v7 = vadd.f32 %v216_v61, %v215_v60  ;;  %v253_v8 = vmul.f32 %v209_v46, %v209_v46 }
  0x1e   : > { %v254_v9 = vmul.f32 %v213_v54, %v213_v54  ;;  %v261_v10 = vmul.f32 %v210_v47, %v210_v47  ;;  %643 = vmatpush3.bf16.msra.mxu0 %v642_v63  ;;  %653 = vmatprep.subr.bf16.mxu1 %v714_v0  ;;  %v299_v13 = vadd.f32 %v291_v3, %v267_v56  ;;  %v717_v58 = vmov 1.0  }
  0x1f   : > { %v300_v14 = vadd.f32 %v292_v4, %v268_v1  ;;  %v245_v15 = vadd.f32 %v237_v6, %v229_v2  ;;  %644 = vmatprep.subr.bf16.mxu0 %v714_v0  ;;  %v246_v19 = vadd.f32 %v238_v7, %v230_v5  ;;  %v262_v20 = vmul.f32 %v214_v55, %v214_v55 }
  0x20   : > { %v269_v21 = vadd.f32 %v261_v10, %v253_v8  ;;  %v277_v22 = vmul.f32 %v211_v48, %v211_v48  ;;  %v278_v27 = vmul.f32 %v215_v60, %v215_v60  ;;  %v285_v28 = vmul.f32 %v212_v53, %v212_v53 }
  0x21   : > { %v654_v26 = vpack.c.bf16 %v300_v14, %v299_v13  ;;  %309 = vst [vmem:[%s773_s21 + $0x20] sm:$0xff] %v245_v15  ;;  %v286_v29 = vmul.f32 %v216_v61, %v216_v61  ;;  %310 = vst [vmem:[%s773_s21 + $0x28] sm:$0xff] %v246_v19  ;;  %v645_v30 = vpack.c.bf16 %v246_v19, %v245_v15 }
  0x22   : > { %v270_v31 = vadd.f32 %v262_v20, %v254_v9  ;;  %v231_v32 = vadd.f32 %v218_v12, %v217_v11  ;;  %v232_v33 = vadd.f32 %v222_v18, %v221_v17  ;;  %v293_v34 = vadd.f32 %v285_v28, %v277_v22 }
  0x23   : > { %655 = vmatpush3.bf16.msra.mxu1 %v654_v26  ;;  %v294_v35 = vadd.f32 %v286_v29, %v278_v27  ;;  %v239_v36 = vadd.f32 %v220_v23, %v219_v16  ;;  %v240_v37 = vadd.f32 %v224_v25, %v223_v24  ;;  %646 = vmatpush3.bf16.msra.mxu0 %v645_v30 }
  0x24   : > { %656 = vmatprep.subr.bf16.mxu1 %v714_v0  ;;  %v255_v38 = vmul.f32 %v217_v11, %v217_v11  ;;  %v256_v39 = vmul.f32 %v221_v17, %v221_v17  ;;  %v263_v40 = vmul.f32 %v218_v12, %v218_v12  ;;  %v301_v41 = vadd.f32 %v293_v34, %v269_v21 }
  0x25   : > { %v302_v42 = vadd.f32 %v294_v35, %v270_v31  ;;  %647 = vmatprep.subr.bf16.mxu0 %v714_v0  ;;  %v247_v43 = vadd.f32 %v239_v36, %v231_v32  ;;  %v248_v44 = vadd.f32 %v240_v37, %v232_v33  ;;  %v264_v45 = vmul.f32 %v222_v18, %v222_v18 }
  0x26   : > { %v271_v46 = vadd.f32 %v263_v40, %v255_v38  ;;  %v279_v47 = vmul.f32 %v219_v16, %v219_v16  ;;  %v280_v48 = vmul.f32 %v223_v24, %v223_v24  ;;  %v287_v51 = vmul.f32 %v220_v23, %v220_v23 }
  0x27   : > { %v657_v49 = vpack.c.bf16 %v302_v42, %v301_v41  ;;  %311 = vst [vmem:[%s773_s21 + $0x30] sm:$0xff] %v247_v43  ;;  %312 = vst [vmem:[%s773_s21 + $0x38] sm:$0xff] %v248_v44  ;;  %v648_v50 = vpack.c.bf16 %v248_v44, %v247_v43  ;;  %v288_v52 = vmul.f32 %v224_v25, %v224_v25 }
  0x28   : > { %v272_v53 = vadd.f32 %v264_v45, %v256_v39  ;;  %v295_v54 = vadd.f32 %v287_v51, %v279_v47 }
  0x29   : > { %658 = vmatpush3.bf16.msra.mxu1 %v657_v49  ;;  %649 = vmatpush3.bf16.msra.mxu0 %v648_v50  ;;  %v296_v55 = vadd.f32 %v288_v52, %v280_v48 }
  0x2a   : > { %659 = vmatprep.subr.bf16.mxu1 %v714_v0  ;;  %v303_v56 = vadd.f32 %v295_v54, %v271_v46 }
  0x2b   : > { %v304_v57 = vadd.f32 %v296_v55, %v272_v53 }
  0x2c   : > { %617 = vmatmul.mubr.msk.f32.vlgmr.msra.gmra.mrb[0].mxu0 %vm314_vm1, %v717_v58 }
  0x2d   : > { %v660_v59 = vpack.c.bf16 %v304_v57, %v303_v56 }
  0x2f   : > { %661 = vmatpush3.bf16.msra.mxu1 %v660_v59 }
  0x32   : > { %636 = vmatmul.mubr.msk.f32.vlgmr.msra.gmra.mrb[0].mxu1 %vm314_vm1, %v717_v58 }
  0xff   : > { %v384_v60 = vpop.f32.mrb[0].mxu0 }
 0x100   : > { %v618_v61 = vpop.f32.mrb[1].mxu0  ;;  %389 = vst [vmem:[%s186_s25] sm:$0xff] %v384_v60 }
 0x105   : > { %v457_v62 = vpop.f32.mrb[0].mxu1 }
 0x106   : > { %v637_v63 = vpop.f32.mrb[1].mxu1  ;;  %462 = vst [vmem:[%s186_s25 + $0x8] sm:$0xff] %v457_v62 }
 0x107 PF: > { %s13_s11 = sadd.s32 1, %s712_s11   ;;  %s829_s9 = smov %s708_s10 }
 0x108   : > { %p10_p6 = scmp.ge.s32.totalorder %s13_s11, 4   ;;  %s830_s10 = smov %s832_s12 }
 0x10a   :  { %12 = sbr.rel (!%p10_p6) target bundleno = 2 (0x2), region = 70 }

// kernel: transition_layer_forward.3
= control target key start
LH: loop header
LB: loop body
LE: loop exit
PB: predicated region body
PF: predicated region fallthrough
CT: control target
= control target key end

     0   :  { %s522_s1 = inlined_call_operand.vmem [shape: f32[128,128], index: 1, kind: input, shape index: {}]   ;;  %s523_s0 = inlined_call_operand.vmem [shape: f32[128,128], index: 0, kind: input, shape index: {}]   ;;  %s524_s2 = inlined_call_operand.vmem [shape: f32[1,128], index: 2, kind: input, shape index: {}]   ;;  %s525_s3 = inlined_call_operand.vmem [shape: f32[128,128], index: 3, kind: output, shape index: {}]  }
   0x1   :  { %v30_v0 = vld [vmem:[%s522_s1] sm:$0xff]  ;;  %v31_v1 = vld [vmem:[%s522_s1 + $0x8] sm:$0xff]  ;;  %v32_v2 = vld [vmem:[%s522_s1 + $0x10] sm:$0xff] }
   0x2   :  { %v307_v3 = vpack.c.bf16 %v31_v1, %v30_v0  ;;  %v33_v4 = vld [vmem:[%s522_s1 + $0x18] sm:$0xff]  ;;  %v34_v6 = vld [vmem:[%s522_s1 + $0x20] sm:$0xff]  ;;  %v35_v7 = vld [vmem:[%s522_s1 + $0x28] sm:$0xff] }
   0x3   :  { %v311_v5 = vpack.c.bf16 %v33_v4, %v32_v2  ;;  %v315_v8 = vpack.c.bf16 %v35_v7, %v34_v6  ;;  %v14_v9 = vld [vmem:[%s523_s0] sm:$0xff]  ;;  %v36_v11 = vld [vmem:[%s522_s1 + $0x30] sm:$0xff]  ;;  %v37_v12 = vld [vmem:[%s522_s1 + $0x38] sm:$0xff] }
   0x4   :  { %308 = vmatprep.subr.bf16.mxu0 %v307_v3  ;;  %339 = vmatprep.subr.bf16.mxu1 %v307_v3  ;;  %v22_v10 = vld [vmem:[%s523_s0 + $0x40] sm:$0xff]  ;;  %v319_v13 = vpack.c.bf16 %v37_v12, %v36_v11  ;;  %v39_v15 = vld [vmem:[%s522_s1 + $0x48] sm:$0xff]  ;;  %v40_v17 = vld [vmem:[%s522_s1 + $0x50] sm:$0xff] }
   0x5   :  { %310 = vmatpush3.bf16.msra.mxu0 %v307_v3  ;;  %347 = vmatpush3.bf16.msra.mxu1 %v307_v3  ;;  %v38_v14 = vld [vmem:[%s522_s1 + $0x40] sm:$0xff]  ;;  %v41_v18 = vld [vmem:[%s522_s1 + $0x58] sm:$0xff]  ;;  %v43_v21 = vld [vmem:[%s522_s1 + $0x68] sm:$0xff] }
   0x6   :  { %312 = vmatprep.subr.bf16.mxu0 %v311_v5  ;;  %340 = vmatprep.subr.bf16.mxu1 %v311_v5  ;;  %v323_v16 = vpack.c.bf16 %v39_v15, %v38_v14  ;;  %v327_v19 = vpack.c.bf16 %v41_v18, %v40_v17  ;;  %v42_v20 = vld [vmem:[%s522_s1 + $0x60] sm:$0xff]  ;;  %v44_v23 = vld [vmem:[%s522_s1 + $0x70] sm:$0xff]  ;;  %v45_v24 = vld [vmem:[%s522_s1 + $0x78] sm:$0xff] }
   0x7   :  { %283 = vmatprep.mubr.f32.mxu0 %v14_v9  ;;  %295 = vmatprep.mubr.f32.mxu1 %v22_v10  ;;  %v331_v22 = vpack.c.bf16 %v43_v21, %v42_v20  ;;  %v335_v25 = vpack.c.bf16 %v45_v24, %v44_v23  ;;  %v15_v26 = vld [vmem:[%s523_s0 + $0x8] sm:$0xff]  ;;  %v16_v28 = vld [vmem:[%s523_s0 + $0x10] sm:$0xff]  ;;  %v17_v30 = vld [vmem:[%s523_s0 + $0x18] sm:$0xff] }
   0x8   :  { %v23_v27 = vld [vmem:[%s523_s0 + $0x48] sm:$0xff]  ;;  %v24_v29 = vld [vmem:[%s523_s0 + $0x50] sm:$0xff]  ;;  %v25_v31 = vld [vmem:[%s523_s0 + $0x58] sm:$0xff] }
   0x9   :  { %314 = vmatpush3.bf16.msra.mxu0 %v311_v5  ;;  %348 = vmatpush3.bf16.msra.mxu1 %v311_v5  ;;  %v18_v32 = vld [vmem:[%s523_s0 + $0x20] sm:$0xff]  ;;  %v19_v34 = vld [vmem:[%s523_s0 + $0x28] sm:$0xff]  ;;  %v20_v36 = vld [vmem:[%s523_s0 + $0x30] sm:$0xff] }
   0xa   :  { %316 = vmatprep.subr.bf16.mxu0 %v315_v8  ;;  %341 = vmatprep.subr.bf16.mxu1 %v315_v8  ;;  %v26_v33 = vld [vmem:[%s523_s0 + $0x60] sm:$0xff]  ;;  %v27_v35 = vld [vmem:[%s523_s0 + $0x68] sm:$0xff]  ;;  %v28_v37 = vld [vmem:[%s523_s0 + $0x70] sm:$0xff] }
   0xb   :  { %v21_v38 = vld [vmem:[%s523_s0 + $0x38] sm:$0xff]  ;;  %v218_v40 = vld [vmem:[%s524_s2] ss:$0 sm:$0xff] }
   0xc   :  { %v29_v39 = vld [vmem:[%s523_s0 + $0x78] sm:$0xff] }
   0xd   :  { %318 = vmatpush3.bf16.msra.mxu0 %v315_v8  ;;  %349 = vmatpush3.bf16.msra.mxu1 %v315_v8 }
   0xe   :  { %320 = vmatprep.subr.bf16.mxu0 %v319_v13  ;;  %342 = vmatprep.subr.bf16.mxu1 %v319_v13 }
  0x11   :  { %322 = vmatpush3.bf16.msra.mxu0 %v319_v13  ;;  %350 = vmatpush3.bf16.msra.mxu1 %v319_v13 }
  0x12   :  { %324 = vmatprep.subr.bf16.mxu0 %v323_v16  ;;  %343 = vmatprep.subr.bf16.mxu1 %v323_v16 }
  0x15   :  { %326 = vmatpush3.bf16.msra.mxu0 %v323_v16  ;;  %351 = vmatpush3.bf16.msra.mxu1 %v323_v16 }
  0x16   :  { %328 = vmatprep.subr.bf16.mxu0 %v327_v19  ;;  %344 = vmatprep.subr.bf16.mxu1 %v327_v19 }
  0x19   :  { %330 = vmatpush3.bf16.msra.mxu0 %v327_v19  ;;  %352 = vmatpush3.bf16.msra.mxu1 %v327_v19 }
  0x1a   :  { %332 = vmatprep.subr.bf16.mxu0 %v331_v22  ;;  %345 = vmatprep.subr.bf16.mxu1 %v331_v22 }
  0x1d   :  { %334 = vmatpush3.bf16.msra.mxu0 %v331_v22  ;;  %353 = vmatpush3.bf16.msra.mxu1 %v331_v22 }
  0x1e   :  { %336 = vmatprep.subr.bf16.mxu0 %v335_v25  ;;  %346 = vmatprep.subr.bf16.mxu1 %v335_v25 }
  0x21   :  { %338 = vmatpush3.bf16.msra.mxu0 %v335_v25  ;;  %354 = vmatpush3.bf16.msra.mxu1 %v335_v25 }
  0x24   :  { %284 = vmatmul.mubr.f32.vlgmr.msra.gmra.mrb[0].mxu0 %v15_v26  ;;  %296 = vmatmul.mubr.f32.vlgmr.msra.gmra.mrb[0].mxu1 %v23_v27 }
  0x25   :  { %286 = vmatprep.mubr.f32.mxu0 %v16_v28  ;;  %298 = vmatprep.mubr.f32.mxu1 %v24_v29 }
  0x28   :  { %287 = vmatmul.mubr.f32.gmra.mrb[2].mxu0 %v17_v30  ;;  %299 = vmatmul.mubr.f32.gmra.mrb[2].mxu1 %v25_v31 }
  0x29   :  { %289 = vmatprep.mubr.f32.mxu0 %v18_v32  ;;  %301 = vmatprep.mubr.f32.mxu1 %v26_v33 }
  0x2c   :  { %290 = vmatmul.mubr.f32.gmra.mrb[4].mxu0 %v19_v34  ;;  %302 = vmatmul.mubr.f32.gmra.mrb[4].mxu1 %v27_v35 }
  0x2d   :  { %292 = vmatprep.mubr.f32.mxu0 %v20_v36  ;;  %304 = vmatprep.mubr.f32.mxu1 %v28_v37 }
  0x30   :  { %293 = vmatmul.mubr.f32.gmra.mrb[6].mxu0 %v21_v38  ;;  %305 = vmatmul.mubr.f32.gmra.mrb[6].mxu1 %v29_v39 }
  0xf7   :  { %v285_v41 = vpop.f32.mrb[0].mxu0  ;;  %v297_v42 = vpop.f32.mrb[0].mxu1 }
  0xf8   :  { %v125_v43 = vadd.f32 %v285_v41, %v218_v40  ;;  %v165_v44 = vadd.f32 %v297_v42, %v218_v40  ;;  %v119_v45 = vpop.f32.mrb[1].mxu0  ;;  %v159_v46 = vpop.f32.mrb[1].mxu1 }
  0xf9   :  { %v120_v47 = vadd.f32 %v218_v40, %v119_v45  ;;  %v160_v48 = vadd.f32 %v218_v40, %v159_v46 }
  0xfa   :  { %199 = vst [vmem:[%s525_s3 + $0x8] sm:$0xff] %v125_v43  ;;  %207 = vst [vmem:[%s525_s3 + $0x48] sm:$0xff] %v165_v44 }
  0xfb   :  { %198 = vst [vmem:[%s525_s3] sm:$0xff] %v120_v47  ;;  %206 = vst [vmem:[%s525_s3 + $0x40] sm:$0xff] %v160_v48  ;;  %v288_v49 = vpop.f32.mrb[2].mxu0  ;;  %v300_v50 = vpop.f32.mrb[2].mxu1 }
  0xfc   :  { %v135_v51 = vadd.f32 %v288_v49, %v218_v40  ;;  %v175_v52 = vadd.f32 %v300_v50, %v218_v40  ;;  %v129_v53 = vpop.f32.mrb[3].mxu0  ;;  %v169_v54 = vpop.f32.mrb[3].mxu1 }
  0xfd   :  { %v130_v55 = vadd.f32 %v218_v40, %v129_v53  ;;  %v170_v56 = vadd.f32 %v218_v40, %v169_v54 }
  0xfe   :  { %201 = vst [vmem:[%s525_s3 + $0x18] sm:$0xff] %v135_v51  ;;  %209 = vst [vmem:[%s525_s3 + $0x58] sm:$0xff] %v175_v52 }
  0xff   :  { %200 = vst [vmem:[%s525_s3 + $0x10] sm:$0xff] %v130_v55  ;;  %208 = vst [vmem:[%s525_s3 + $0x50] sm:$0xff] %v170_v56  ;;  %v291_v57 = vpop.f32.mrb[4].mxu0  ;;  %v303_v58 = vpop.f32.mrb[4].mxu1 }
 0x100   :  { %v145_v59 = vadd.f32 %v291_v57, %v218_v40  ;;  %v185_v60 = vadd.f32 %v303_v58, %v218_v40  ;;  %v139_v61 = vpop.f32.mrb[5].mxu0  ;;  %v179_v62 = vpop.f32.mrb[5].mxu1 }
 0x101   :  { %v140_v63 = vadd.f32 %v218_v40, %v139_v61  ;;  %v180_v0 = vadd.f32 %v218_v40, %v179_v62 }
 0x102   :  { %203 = vst [vmem:[%s525_s3 + $0x28] sm:$0xff] %v145_v59  ;;  %211 = vst [vmem:[%s525_s3 + $0x68] sm:$0xff] %v185_v60 }
 0x103   :  { %202 = vst [vmem:[%s525_s3 + $0x20] sm:$0xff] %v140_v63  ;;  %210 = vst [vmem:[%s525_s3 + $0x60] sm:$0xff] %v180_v0  ;;  %v294_v1 = vpop.f32.mrb[6].mxu0  ;;  %v306_v2 = vpop.f32.mrb[6].mxu1 }
 0x104   :  { %v155_v3 = vadd.f32 %v294_v1, %v218_v40  ;;  %v195_v4 = vadd.f32 %v306_v2, %v218_v40  ;;  %v149_v5 = vpop.f32.mrb[7].mxu0  ;;  %v189_v6 = vpop.f32.mrb[7].mxu1 }
 0x105   :  { %v150_v7 = vadd.f32 %v218_v40, %v149_v5  ;;  %v190_v8 = vadd.f32 %v218_v40, %v189_v6 }
 0x106   :  { %205 = vst [vmem:[%s525_s3 + $0x38] sm:$0xff] %v155_v3  ;;  %213 = vst [vmem:[%s525_s3 + $0x78] sm:$0xff] %v195_v4 }
 0x107   :  { %204 = vst [vmem:[%s525_s3 + $0x30] sm:$0xff] %v150_v7  ;;  %212 = vst [vmem:[%s525_s3 + $0x70] sm:$0xff] %v190_v8 }

</bundles_post_ra>
